<compile_context>
chip_gen: v5e
topology: v5e:2x2
jax: 0.10.0
libtpu: 0.0.40
codegen_flags: <defaults>
</compile_context>

<pallas_src>
import math

import jax
import jax.numpy as jnp
from jax.experimental import pallas as pl
from jax.experimental.pallas import tpu as pltpu

TIME_EMBED_DIM = 32
HIDDEN_DIM = 128
HALF_DIM = TIME_EMBED_DIM // 2
EMB_SCALE = math.log(10000.0) / (HALF_DIM - 1)

ROT_ROWS = 3
RT_ROWS = 4                      # [rx, ry, rz, t]
HEAD_ROWS = 8                    # [1, mag, 0*6]  (8-aligned block)
K_AUG = HEAD_ROWS + 2 * HALF_DIM  # 40


def _round_up(x, m):
    return ((x + m - 1) // m) * m


def so3_score_kernel(rt_ref, freq_ref,
                     w1_ref, w2_ref, b2_ref, w3_ref, b3_ref,
                     out_ref):
    rt = rt_ref[...]                                  # (4, TB)  batch on lanes
    tb = rt.shape[1]
    rot = rt[0:ROT_ROWS, :]                           # (3, TB)
    t = rt[ROT_ROWS:ROT_ROWS + 1, :]                  # (1, TB)

    # SO(3) invariant |rot|: sublane reduce over 3 rows (lanes stay dense).
    mag = jnp.sqrt(jnp.sum(rot * rot, axis=0, keepdims=True))          # (1, TB)

    # Sinusoidal time embedding, batch on the lane axis.
    # TODO(synk): if t is shared / low-cardinality across the batch (typical in
    # diffusion sampling), precompute the 32-dim embedding outside the kernel
    # and pass it as a resident operand instead of per-lane sin/cos here.
    args = freq_ref[...] * t                                            # (16, TB)
    sin_e = jnp.sin(args)
    cos_e = jnp.cos(args)

    # Layer-1 feature tile: [1 (bias feature), mag, 0*6, sin(16), cos(16)].
    # Constant rows are plain splats (no iota/where); concat offsets 8-aligned.
    feat = jnp.concatenate([
        jnp.ones((1, tb), jnp.float32),
        mag,
        jnp.zeros((HEAD_ROWS - 2, tb), jnp.float32),
        sin_e,
        cos_e,
    ], axis=0)                                                          # (40, TB)

    # Layer 1: single MXU matmul, bias folded into the augmented weight.
    h1 = jnp.maximum(
        jnp.dot(w1_ref[...], feat, preferred_element_type=jnp.float32), 0.0)
    # Layer 2
    h2 = jnp.maximum(
        jnp.dot(w2_ref[...], h1, preferred_element_type=jnp.float32) + b2_ref[...],
        0.0)
    # Layer 3 -> per-example scalar alpha
    alpha = (jnp.dot(w3_ref[...], h2, preferred_element_type=jnp.float32)
             + b3_ref[...])                                             # (1, TB)

    # Equivariant output: alpha(|rot|, t) * rot_vec  (lane-dense (3, TB) store).
    out_ref[...] = alpha * rot


def init_params(key):
    """Deterministic Xavier-uniform weights, zero biases (matches nn.init in __init__)."""
    k1, k2, k3 = jax.random.split(key, 3)

    def xavier(k, fan_in, fan_out):
        lim = math.sqrt(6.0 / (fan_in + fan_out))
        return jax.random.uniform(k, (fan_in, fan_out), jnp.float32, -lim, lim)

    w1 = xavier(k1, 1 + TIME_EMBED_DIM, HIDDEN_DIM)   # (33, 128)
    b1 = jnp.zeros((HIDDEN_DIM,), jnp.float32)
    w2 = xavier(k2, HIDDEN_DIM, HIDDEN_DIM)           # (128, 128)
    b2 = jnp.zeros((HIDDEN_DIM,), jnp.float32)
    w3 = xavier(k3, HIDDEN_DIM, 1)                    # (128, 1)
    b3 = jnp.zeros((1,), jnp.float32)
    return (w1, b1, w2, b2, w3, b3)


def sinusoid_freqs():
    """Standard diffusion-style sinusoidal embedder frequencies, shape (HALF_DIM,)."""
    return jnp.exp(-EMB_SCALE * jnp.arange(HALF_DIM, dtype=jnp.float32))


def pack_params(params):
    """Repack (in, out)-layout weights into the kernel's transposed / fused layout."""
    w1, b1, w2, b2, w3, b3 = params
    w1_t = w1.T.astype(jnp.float32)                               # (128, 33)
    w1_aug = jnp.concatenate([
        b1.reshape(HIDDEN_DIM, 1).astype(jnp.float32),            # column for the "1" feature
        w1_t[:, 0:1],                                             # mag column
        jnp.zeros((HIDDEN_DIM, HEAD_ROWS - 2), jnp.float32),      # alignment padding columns
        w1_t[:, 1:1 + HALF_DIM],                                  # sin columns
        w1_t[:, 1 + HALF_DIM:],                                   # cos columns
    ], axis=1)                                                    # (128, K_AUG)
    w2_t = w2.T.astype(jnp.float32)                               # (128, 128)
    b2_c = b2.reshape(HIDDEN_DIM, 1).astype(jnp.float32)          # (128, 1)
    w3_r = w3.T.astype(jnp.float32)                               # (1, 128)
    b3_c = b3.reshape(1, 1).astype(jnp.float32)                   # (1, 1)
    return (w1_aug, w2_t, b2_c, w3_r, b3_c)


def so3_equiv_score_net_packed(rt, params, *, block_b=2048):
    """Core entry point (preferred layout).

    rt: (4, B) f32 with rows [rot_x, rot_y, rot_z, t]; returns score as (3, B).
    Keeping this column-major packed layout end-to-end avoids the transpose
    round-trips of the (B, 3) wrapper below.
    """
    assert rt.shape[0] == RT_ROWS
    assert block_b % 128 == 0, "batch tile must be a multiple of 128 lanes"
    assert block_b <= 8192, "cap the tile for v7x's 64 MiB per-core VMEM"
    B = rt.shape[1]

    # Keep >= 2 tiles whenever possible so the 'parallel' batch axis can shard
    # across both v7x TensorCores (harmless on single-TC v5e/v6e).
    block_eff = max(128, min(block_b, _round_up(pl.cdiv(B, 2), 128)))
    num_tiles = pl.cdiv(B, block_eff)
    b_pad = num_tiles * block_eff

    rt = rt.astype(jnp.float32)
    if b_pad != B:
        rt = jnp.pad(rt, ((0, 0), (0, b_pad - B)))

    w1_aug, w2_t, b2_c, w3_r, b3_c = pack_params(params)
    freqs_col = sinusoid_freqs().reshape(HALF_DIM, 1)

    batch_map = lambda i: (0, i)
    const_map = lambda i: (0, 0)     # weights/consts stay resident in VMEM

    # Explicit VMEM budget: ~1.5 KB/example of live intermediates + double-
    # buffered I/O tiles + ~90 KB resident weights, with 2x headroom, capped
    # below v7x's 64 MiB physical VMEM.
    bytes_per_ex = 4 * (2 * RT_ROWS + 2 * ROT_ROWS + K_AUG
                        + 3 * HALF_DIM + 2 * HIDDEN_DIM + 8)
    weight_bytes = 4 * (HIDDEN_DIM * (K_AUG + HIDDEN_DIM + 3) + HALF_DIM + 4)
    vmem_limit = int(min(48 * 2**20,
                         max(32 * 2**20,
                             2 * (bytes_per_ex * block_eff + weight_bytes))))

    out_cm = pl.pallas_call(
        so3_score_kernel,
        out_shape=jax.ShapeDtypeStruct((ROT_ROWS, b_pad), jnp.float32),
        grid=(num_tiles,),
        in_specs=[
            pl.BlockSpec((RT_ROWS, block_eff), batch_map),        # packed [rot; t]
            pl.BlockSpec((HALF_DIM, 1), const_map),               # freqs
            pl.BlockSpec((HIDDEN_DIM, K_AUG), const_map),         # W1 (augmented, transposed)
            pl.BlockSpec((HIDDEN_DIM, HIDDEN_DIM), const_map),    # W2^T
            pl.BlockSpec((HIDDEN_DIM, 1), const_map),             # b2
            pl.BlockSpec((1, HIDDEN_DIM), const_map),             # W3^T
            pl.BlockSpec((1, 1), const_map),                      # b3
        ],
        out_specs=pl.BlockSpec((ROT_ROWS, block_eff), batch_map),
        compiler_params=pltpu.CompilerParams(
            dimension_semantics=("parallel",),
            vmem_limit_bytes=vmem_limit),
    )(rt, freqs_col, w1_aug, w2_t, b2_c, w3_r, b3_c)

    return out_cm[:, :B]


def so3_equiv_score_net(rot_vec, t, params, *, block_b=2048):
    """PyTorch-contract wrapper: rot_vec (B, 3), t (B,) -> (B, 3).

    NOTE: the transpose/stack here are extra HBM passes; in a surrounding model
    prefer keeping the (4, B) packed layout and calling
    so3_equiv_score_net_packed directly.
    """
    B = rot_vec.shape[0]
    rt = jnp.concatenate(
        [rot_vec.astype(jnp.float32).T, t.astype(jnp.float32).reshape(1, B)],
        axis=0)                                                   # (4, B)
    return so3_equiv_score_net_packed(rt, params, block_b=block_b).T


def so3_equiv_score_net_ref(rot_vec, t, params):
    """Pure-JAX reference mirroring the PyTorch forward (concat path)."""
    w1, b1, w2, b2, w3, b3 = params
    mag = jnp.linalg.norm(rot_vec, axis=-1, keepdims=True)                   # (B, 1)
    args = t.reshape(-1, 1) * sinusoid_freqs().reshape(1, HALF_DIM)          # (B, 16)
    t_emb = jnp.concatenate([jnp.sin(args), jnp.cos(args)], axis=-1)         # (B, 32)
    feats = jnp.concatenate([mag, t_emb], axis=-1)                           # (B, 33)
    h = jax.nn.relu(feats @ w1 + b1)
    h = jax.nn.relu(h @ w2 + b2)
    alpha = h @ w3 + b3                                                      # (B, 1)
    return alpha * rot_vec


if __name__ == "__main__":
    key = jax.random.PRNGKey(0)
    k_param, k_rot, k_t = jax.random.split(key, 3)

    # B deliberately not a multiple of 128: with the auto tile clamp this gives
    # a 2-step grid (block_eff=128), exercising the multi-tile pipeline, the
    # megacore-friendly >=2-tile split, and the ragged-tail zero-padding path.
    B = 200
    params = init_params(k_param)
    rot_vec = jax.random.normal(k_rot, (B, 3), jnp.float32)
    t = jax.random.uniform(k_t, (B,), jnp.float32, 0.0, 1000.0)

    out = so3_equiv_score_net(rot_vec, t, params)     # default block_b=2048
    out = jax.block_until_ready(out)

    ref = so3_equiv_score_net_ref(rot_vec, t, params)
    assert out.shape == (B, 3)
    # f32 everywhere; slight slack for sin/cos of args up to ~1e3 and MXU
    # accumulation-order differences vs. the XLA reference.
    assert jnp.allclose(out, ref, atol=2e-4, rtol=2e-4), "Pallas kernel mismatch vs JAX reference"

    print("KERNEL_OK")
</pallas_src>

<mosaic_0001>
module attributes {stable_mosaic.version = 11 : i64} {
  func.func @so3_score_kernel(%arg0: i32, %arg1: memref<4x128xf32, #tpu.memory_space<vmem>>, %arg2: memref<16x1xf32, #tpu.memory_space<vmem>>, %arg3: memref<128x40xf32, #tpu.memory_space<vmem>>, %arg4: memref<128x128xf32, #tpu.memory_space<vmem>>, %arg5: memref<128x1xf32, #tpu.memory_space<vmem>>, %arg6: memref<1x128xf32, #tpu.memory_space<vmem>>, %arg7: memref<1x1xf32, #tpu.memory_space<vmem>>, %arg8: memref<3x128xf32, #tpu.memory_space<vmem>>) attributes {dimension_semantics = [#tpu.dimension_semantics<parallel>], iteration_bounds = array<i64: 2>, scalar_prefetch = 0 : i64, scratch_operands = 0 : i64, tpu.core_type = #tpu.core_type<tc>, window_params = [{transform_indices = @transform_0, window_bounds = array<i64: 4, 128>}, {pipeline_mode = #tpu.pipeline_mode<synchronous>, transform_indices = @transform_1, window_bounds = array<i64: 16, 1>}, {pipeline_mode = #tpu.pipeline_mode<synchronous>, transform_indices = @transform_2, window_bounds = array<i64: 128, 40>}, {pipeline_mode = #tpu.pipeline_mode<synchronous>, transform_indices = @transform_3, window_bounds = array<i64: 128, 128>}, {pipeline_mode = #tpu.pipeline_mode<synchronous>, transform_indices = @transform_4, window_bounds = array<i64: 128, 1>}, {pipeline_mode = #tpu.pipeline_mode<synchronous>, transform_indices = @transform_5, window_bounds = array<i64: 1, 128>}, {pipeline_mode = #tpu.pipeline_mode<synchronous>, transform_indices = @transform_6, window_bounds = array<i64: 1, 1>}, {transform_indices = @transform_7, window_bounds = array<i64: 3, 128>}]} {
    %c0 = arith.constant 0 : index
    %c0_0 = arith.constant 0 : index
    %0 = vector.load %arg1[%c0, %c0_0] : memref<4x128xf32, #tpu.memory_space<vmem>>, vector<4x128xf32>
    %1 = vector.extract_strided_slice %0 {offsets = [0, 0], sizes = [3, 128], strides = [1, 1]} : vector<4x128xf32> to vector<3x128xf32>
    %2 = vector.extract_strided_slice %0 {offsets = [3, 0], sizes = [1, 128], strides = [1, 1]} : vector<4x128xf32> to vector<1x128xf32>
    %3 = arith.mulf %1, %1 : vector<3x128xf32>
    %cst = arith.constant dense<0.000000e+00> : vector<128xf32>
    %4 = vector.multi_reduction <add>, %3, %cst [0] : vector<3x128xf32> to vector<128xf32>
    %5 = vector.shape_cast %4 : vector<128xf32> to vector<1x128xf32>
    %6 = math.sqrt %5 : vector<1x128xf32>
    %c0_1 = arith.constant 0 : index
    %c0_2 = arith.constant 0 : index
    %7 = vector.load %arg2[%c0_1, %c0_2] : memref<16x1xf32, #tpu.memory_space<vmem>>, vector<16x1xf32>
    %8 = vector.broadcast %7 : vector<16x1xf32> to vector<16x128xf32>
    %9 = vector.broadcast %2 : vector<1x128xf32> to vector<16x128xf32>
    %10 = arith.mulf %8, %9 : vector<16x128xf32>
    %11 = math.sin %10 : vector<16x128xf32>
    %12 = math.cos %10 : vector<16x128xf32>
    %cst_3 = arith.constant 1.000000e+00 : f32
    %13 = vector.broadcast %cst_3 : f32 to vector<1x128xf32>
    %cst_4 = arith.constant 0.000000e+00 : f32
    %14 = vector.broadcast %cst_4 : f32 to vector<6x128xf32>
    %15 = tpu.concatenate %13, %6, %14, %11, %12 in 0 : vector<1x128xf32>, vector<1x128xf32>, vector<6x128xf32>, vector<16x128xf32>, vector<16x128xf32> -> vector<40x128xf32>
    %c0_5 = arith.constant 0 : index
    %c0_6 = arith.constant 0 : index
    %16 = vector.load %arg3[%c0_5, %c0_6] : memref<128x40xf32, #tpu.memory_space<vmem>>, vector<128x40xf32>
    %cst_7 = arith.constant dense<0.000000e+00> : vector<128x128xf32>
    %17 = tpu.matmul %16, %15, %cst_7 {dimension_numbers = #tpu.dot_dimension_numbers<[1], [0], [0], [1], [0, 0, 1, 1], [], []>} : vector<128x40xf32>, vector<40x128xf32>, vector<128x128xf32> -> vector<128x128xf32>
    %cst_8 = arith.constant 0.000000e+00 : f32
    %18 = vector.broadcast %cst_8 : f32 to vector<128x128xf32>
    %19 = arith.maximumf %17, %18 : vector<128x128xf32>
    %c0_9 = arith.constant 0 : index
    %c0_10 = arith.constant 0 : index
    %20 = vector.load %arg4[%c0_9, %c0_10] : memref<128x128xf32, #tpu.memory_space<vmem>>, vector<128x128xf32>
    %cst_11 = arith.constant dense<0.000000e+00> : vector<128x128xf32>
    %21 = tpu.matmul %20, %19, %cst_11 {dimension_numbers = #tpu.dot_dimension_numbers<[1], [0], [0], [1], [0, 0, 1, 1], [], []>} : vector<128x128xf32>, vector<128x128xf32>, vector<128x128xf32> -> vector<128x128xf32>
    %c0_12 = arith.constant 0 : index
    %c0_13 = arith.constant 0 : index
    %22 = vector.load %arg5[%c0_12, %c0_13] : memref<128x1xf32, #tpu.memory_space<vmem>>, vector<128x1xf32>
    %23 = vector.broadcast %22 : vector<128x1xf32> to vector<128x128xf32>
    %24 = arith.addf %21, %23 : vector<128x128xf32>
    %cst_14 = arith.constant 0.000000e+00 : f32
    %25 = vector.broadcast %cst_14 : f32 to vector<128x128xf32>
    %26 = arith.maximumf %24, %25 : vector<128x128xf32>
    %c0_15 = arith.constant 0 : index
    %c0_16 = arith.constant 0 : index
    %27 = vector.load %arg6[%c0_15, %c0_16] : memref<1x128xf32, #tpu.memory_space<vmem>>, vector<1x128xf32>
    %cst_17 = arith.constant dense<0.000000e+00> : vector<1x128xf32>
    %28 = tpu.matmul %27, %26, %cst_17 {dimension_numbers = #tpu.dot_dimension_numbers<[1], [0], [0], [1], [0, 0, 1, 1], [], []>} : vector<1x128xf32>, vector<128x128xf32>, vector<1x128xf32> -> vector<1x128xf32>
    %c0_18 = arith.constant 0 : index
    %c0_19 = arith.constant 0 : index
    %29 = vector.load %arg7[%c0_18, %c0_19] : memref<1x1xf32, #tpu.memory_space<vmem>>, vector<1x1xf32>
    %30 = vector.broadcast %29 : vector<1x1xf32> to vector<1x128xf32>
    %31 = arith.addf %28, %30 : vector<1x128xf32>
    %32 = vector.broadcast %31 : vector<1x128xf32> to vector<3x128xf32>
    %33 = arith.mulf %32, %1 : vector<3x128xf32>
    %c0_20 = arith.constant 0 : index
    %c0_21 = arith.constant 0 : index
    %34 = vector.load %arg8[%c0_20, %c0_21] : memref<3x128xf32, #tpu.memory_space<vmem>>, vector<3x128xf32>
    tpu.vector_store %arg8[%c0_20, %c0_21], %33 {strides = array<i32>} : memref<3x128xf32, #tpu.memory_space<vmem>>, vector<3x128xf32>,
    return
  }
  func.func @transform_0(%arg0: i32) -> (i32, i32) {
    %c0_i32 = arith.constant 0 : i32
    %c0_i32_0 = arith.constant 0 : i32
    return %c0_i32, %arg0 : i32, i32
  }
  func.func @transform_1(%arg0: i32) -> (i32, i32) {
    %c0_i32 = arith.constant 0 : i32
    %c0_i32_0 = arith.constant 0 : i32
    %c0_i32_1 = arith.constant 0 : i32
    return %c0_i32, %c0_i32_0 : i32, i32
  }
  func.func @transform_2(%arg0: i32) -> (i32, i32) {
    %c0_i32 = arith.constant 0 : i32
    %c0_i32_0 = arith.constant 0 : i32
    %c0_i32_1 = arith.constant 0 : i32
    return %c0_i32, %c0_i32_0 : i32, i32
  }
  func.func @transform_3(%arg0: i32) -> (i32, i32) {
    %c0_i32 = arith.constant 0 : i32
    %c0_i32_0 = arith.constant 0 : i32
    %c0_i32_1 = arith.constant 0 : i32
    return %c0_i32, %c0_i32_0 : i32, i32
  }
  func.func @transform_4(%arg0: i32) -> (i32, i32) {
    %c0_i32 = arith.constant 0 : i32
    %c0_i32_0 = arith.constant 0 : i32
    %c0_i32_1 = arith.constant 0 : i32
    return %c0_i32, %c0_i32_0 : i32, i32
  }
  func.func @transform_5(%arg0: i32) -> (i32, i32) {
    %c0_i32 = arith.constant 0 : i32
    %c0_i32_0 = arith.constant 0 : i32
    %c0_i32_1 = arith.constant 0 : i32
    return %c0_i32, %c0_i32_0 : i32, i32
  }
  func.func @transform_6(%arg0: i32) -> (i32, i32) {
    %c0_i32 = arith.constant 0 : i32
    %c0_i32_0 = arith.constant 0 : i32
    %c0_i32_1 = arith.constant 0 : i32
    return %c0_i32, %c0_i32_0 : i32, i32
  }
  func.func @transform_7(%arg0: i32) -> (i32, i32) {
    %c0_i32 = arith.constant 0 : i32
    %c0_i32_0 = arith.constant 0 : i32
    return %c0_i32, %arg0 : i32, i32
  }
}

</mosaic_0001>

<bundles_post_ra>
// kernel: tpu_custom_call.1
= control target key start
LH: loop header
LB: loop body
LE: loop exit
PB: predicated region body
PF: predicated region fallthrough
CT: control target
= control target key end

     0   :  { %s2071_s0 = inlined_call_operand.vmem [shape: f32[4,256], index: 0, kind: input, shape index: {}]   ;;  %s2072_s1 = inlined_call_operand.vmem [shape: f32[16,1], index: 1, kind: input, shape index: {}]   ;;  %s2073_s2 = inlined_call_operand.vmem [shape: f32[128,40], index: 2, kind: input, shape index: {}]   ;;  %s2074_s3 = inlined_call_operand.vmem [shape: f32[128,128], index: 3, kind: input, shape index: {}]   ;;  %s2075_s4 = inlined_call_operand.vmem [shape: f32[128,1], index: 4, kind: input, shape index: {}]   ;;  %s2076_s5 = inlined_call_operand.vmem [shape: f32[1,128], index: 5, kind: input, shape index: {}]   ;;  %s2077_s6 = inlined_call_operand.<no memory space> [shape: f32[1,1], index: 6, kind: input, shape index: {}]   ;;  %s2078_s7 = inlined_call_operand.hbm [shape: f32[3,256], index: 7, kind: output, shape index: {}]  }
   0x1   :  { %v12_v0 = vstv %s2077_s6 }
   0x2   :  { %13 = vst [vmem:[#allocation2] sm:$0x1] %v12_v0 }
   0x3   :  { %14 = vsyncpa [#allocation4], 0 }
   0x4   :  { %16 = vsyncpa [#allocation4 + $0x1], 0  ;;  %s1606_s26 = smov 0   ;;  %s1608_s27 = smov 0  }
   0x5   :  { %s1610_s28 = smov 0   ;;  %s1612_s29 = smov 0  }
   0x6 LB: > { %s1627_s6 = sadd.s32 4294967295, %s1554_s29   ;;  %s1380_s30 = sadd.s32 4294967294, %s1554_s29   ;;  %s1554_s29 = sphi %s1612_s29, %s2086_s29   ;;  %s1550_s28 = sphi %s1610_s28, %s2085_s28   ;;  %s1546_s27 = sphi %s1608_s27, %s2084_s27   ;;  %s1542_s26 = sphi %s1606_s26, %s2083_s26  }
   0x7   : > { %s1631_s8 = sadd.s32 1, %s1554_s29   ;;  %s181_s9 = sadd.s32 1, %s1550_s28 }
   0x8   : > { %s178_s10 = ssub.s32 %s1554_s29, %s1631_s8  ;;  %p191_p0 = scmp.ne.s32.totalorder %s1550_s28, %s1546_s27 }
   0x9   : > { %p179_p1 = scmp.eq.s32.totalorder %s178_s10, 0  ;;  %p192_p2 = scmp.eq.s32.totalorder %s1627_s6, 1 }
   0xa   : > { %p197_p3 = scmp.ne.s32.totalorder %s1546_s27, %s1542_s26  ;;  %p198_p4 = scmp.eq.s32.totalorder %s1380_s30, 1 }
   0xb   : > { %s1642_s11 = scalar_select %p179_p1, %s1550_s28, %s181_s9  }
   0xc   : > { %p1644_p5 = por %p192_p2, %p191_p0  ;;  %p1648_p6 = por %p198_p4, %p197_p3 }
   0xd   : > { %p1383_p7 = scmp.ge.s32.totalorder %s1554_s29, 1  ;;  %p241_p8 = scmp.lt.s32.totalorder %s1554_s29, 3 }
   0xf   : > { %p242_p9 = pnand %p1383_p7, %p241_p8 }
  0x10   : > { %p272_p10 = scmp.lt.s32.totalorder (!%p242_p9), %s1627_s6, 1  ;;  %s269_s22 = sand.u32 (!%p242_p9), 1, %s1546_s27  }
  0x11   : > { %245 = sbr.rel (%p242_p9) target bundleno = 847 (0x34f), region = 48  ;;  %s1384_s23 = sshll.u32 (!%p242_p9), %s269_s22, 2 }
  0x12   : > { %s1416_s24 = sshll.u32 (!%p242_p9), %s1627_s6, 2  ;;  %s271_s10 = scalar_lea.vmem (!%p242_p9), [#allocation3], %s1384_s23 }
  0x13   : > { %s1318_s14 = sshll.u32 (!%p242_p9), %s271_s10, 4  ;;  %s1306_s17 = scalar_lea.sflag (!%p242_p9), [#allocation4], %s269_s22  ;;  %s1319_s14 = int_to_ptr.vmem [resolvable:$true] %s1318_s14 }
  0x14   : > { %s1512_s21 = scalar_lea.hbm (!%p242_p9), %s2078_s7, 8 }
  0x16   : > { %v299_v1 = vld [vmem:[%s2072_s1 + $0x8] sm:$0xff]  ;;  %v1556_v2 = vmov 0   ;;  %v298_v3 = vld [vmem:[%s2072_s1] sm:$0xff]  ;;  %v1108_v4 = vld [vmem:[%s2075_s4 + $0x58] sm:$0xff]  ;;  %s273_s30 = scalar_select %p272_p10, %s1627_s6, 1 }
  0x17   : > { %1486 = vset.pattern.permute.xlu0 %v1556_v2  ;;  %1487 = vset.pattern.permute.xlu1 %v1556_v2  ;;  %v1105_v5 = vld [vmem:[%s2075_s4 + $0x40] sm:$0xff]  ;;  %v1102_v6 = vld [vmem:[%s2075_s4 + $0x28] sm:$0xff]  ;;  %v1099_v7 = vld [vmem:[%s2075_s4 + $0x10] sm:$0xff]  ;;  %v1557_v31 = vmov 2102212464  }
  0x18   : > { %307 = vperm.xlu0 %1486, %v299_v1   ;;  %1488 = vset.pattern.permute.xlu2 %v1556_v2  ;;  %v1275_v8 = vld [vmem:[#allocation2] sm:$0x1]  ;;  %s1385_s9 = sshll.u32 %s273_s30, 2  ;;  %v1558_v33 = vmov 920167782  }
  0x19   : > { %s1680_s15 = scalar_lea.vmem %s2071_s0, %s1385_s9  ;;  %v1559_v36 = vmov 683565275   ;;  %v1560_v39 = vmov 1326507024   ;;  %v1561_v41 = vmov 2475754826   ;;  %s1316_s9 = scalar_lea.hbm %s2078_s7, %s1416_s24 }
  0x1a   : > { %v1683_v9 = vld [vmem:[%s1680_s15] sm:$0xf]  ;;  %v1562_v45 = vmov 2131351028   ;;  %s1320_s16 = sshll.u32 %s1316_s9, 4  ;;  %s1321_s16 = int_to_ptr.hbm [resolvable:$true] %s1320_s16 }
  0x1b   : > { %v310_v10 = vperm.slane %v1683_v9, 3  ;;  %s1506_s18 = sshra.s32 %s1321_s16, 4  ;;  %s1507_s18 = int_to_ptr.hbm [resolvable:$true] %s1506_s18 }
  0x1c   : > { %s1508_s6 = scalar_lea.hbm %s1507_s18, 4  ;;  %p1513_p0 = scmp.lt.s32.totalorder %s1507_s18, %s2078_s7 }
  0x1d   : > { %p1509_p11 = scmp.ne.s32.totalorder %s1507_s18, %s1508_s6  ;;  %p1514_p1 = scmp.lt.s32.totalorder %s1512_s21, %s1508_s6 }
  0x1f   : > { %p1510_p12 = pnand %p1509_p11, %p1644_p5  ;;  %p1515_p2 = por %p1514_p1, %p1513_p0 }
  0x20   : > { %302 = vperm.xlu0 %1486, %v298_v3  }
  0x21   : > { %p1511_p13 = pneg %p1510_p12 }
  0x23   : > { %p1516_p3 = pnand %p1515_p2, %p1511_p13 }
  0x28   : > { %1170 = vperm.xlu0 %1486, %v1108_v4  }
  0x30   : > { %1155 = vperm.xlu0 %1486, %v1105_v5  }
  0x38   : > { %1140 = vperm.xlu0 %1486, %v1102_v6  }
  0x40   : > { %1125 = vperm.xlu0 %1486, %v1099_v7  }
  0x48   : > { %1278 = vperm.xlu0 %1486, %v1275_v8  }
  0x8a   : > { %v308_v11 = vpop.permute.xlu0 %307 }
  0x8b   : > { %v1686_v12 = vmul.f32 %v310_v10, %v308_v11 }
  0x8d   : > { %v471_v13 = vand.u32 2139095040, %v1686_v12  ;;  %v468_v14 = vand.u32 2147483647, %v1686_v12 }
  0x8f   : > { %v472_v15 = vshrl.u32 %v471_v13, 23  ;;  %v475_v16 = vand.u32 8388607, %v468_v14 }
  0x91   : > { %v1389_v17 = vadd.s32 4294967169, %v472_v15  ;;  %v476_v18 = vor.u32 8388608, %v475_v16 }
  0x92   : > { %v303_v19 = vpop.permute.xlu0 %302 }
  0x93   : > { %v478_v20 = vadd.s32 1, %v1389_v17  ;;  %v1692_v21 = vmul.f32 %v310_v10, %v303_v19  ;;  %v1695_v23 = vshll.u32 %v476_v18, 8 }
  0x95   : > { %vm479_vm0 = vcmp.gt.s32.totalorder %v478_v20, 0  ;;  %v316_v22 = vand.u32 2139095040, %v1692_v21  ;;  %v1700_v29 = vand.u32 65535, %v1695_v23  ;;  %v313_v30 = vand.u32 2147483647, %v1692_v21 }
  0x96   : > { %v480_v24 = vsel %vm479_vm0, %v478_v20, 0  ;;  %v518_v16 = vshrl.u32 %v1695_v23, 16 }
  0x97   : > { %v482_v25 = vand.u32 31, %v480_v24  ;;  %v317_v26 = vshrl.u32 %v316_v22, 23  ;;  %v1697_v27 = vshrl.u32 %v480_v24, 5  ;;  %v1718_v0 = vand.u32 8388607, %v313_v30 }
  0x99   : > { %v483_v28 = vsub.s32 32, %v482_v25  ;;  %v494_v32 = vshll.u32 %v1557_v31, %v482_v25  ;;  %v497_v34 = vshll.u32 %v1558_v33, %v482_v25  ;;  %v1386_v35 = vadd.s32 4294967169, %v317_v26 }
  0x9a   : > { %v485_v37 = vshll.u32 %v1559_v36, %v482_v25  ;;  %v488_v43 = vshll.u32 %v1561_v41, %v482_v25  ;;  %v491_v47 = vshll.u32 %v1562_v45, %v482_v25  ;;  %vm503_vm1 = vcmp.lt.s32.totalorder %v1697_v27, 4 }
  0x9b   : > { %v495_v38 = vshrl.u32 %v1558_v33, %v483_v28  ;;  %v498_v40 = vshrl.u32 %v1560_v39, %v483_v28  ;;  %v486_v42 = vshrl.u32 %v1561_v41, %v483_v28  ;;  %v323_v44 = vadd.s32 1, %v1386_v35 }
  0x9c   : > { %v489_v46 = vshrl.u32 %v1562_v45, %v483_v28  ;;  %v492_v48 = vshrl.u32 %v1557_v31, %v483_v28  ;;  %v484_v52 = vshrl.u32 %v1559_v36, %v483_v28  ;;  %vm500_vm3 = vcmp.lt.s32.totalorder %v1697_v27, 1 }
  0x9d   : > { %v496_v49 = vor.u32 %v495_v38, %v494_v32  ;;  %v499_v50 = vor.u32 %v498_v40, %v497_v34  ;;  %v487_v51 = vor.u32 %v486_v42, %v485_v37  ;;  %vm324_vm2 = vcmp.gt.s32.totalorder %v323_v44, 0 }
  0x9e   : > { %v490_v53 = vor.u32 %v489_v46, %v488_v43  ;;  %v493_v54 = vor.u32 %v492_v48, %v491_v47  ;;  %v325_v57 = vsel %vm324_vm2, %v323_v44, 0  ;;  %vm502_vm4 = vcmp.lt.s32.totalorder %v1697_v27, 3 }
  0x9f   : > { %v509_v55 = vsel %vm503_vm1, %v496_v49, 920167782  ;;  %v513_v56 = vsel %vm503_vm1, %v499_v50, 1326507024  ;;  %v1713_v58 = vand.u32 31, %v325_v57  ;;  %v1720_v1 = vshrl.u32 %v325_v57, 5 }
  0xa0   : > { %v505_v59 = vsel %vm503_vm1, %v493_v54, 2102212464  ;;  %v508_v60 = vsel %vm500_vm3, %v487_v51, %v490_v53  ;;  %v510_v61 = vsel %vm502_vm4, %v493_v54, %v509_v55  ;;  %v512_v62 = vsel %vm500_vm3, %v490_v53, %v493_v54 }
  0xa1   : > { %v514_v63 = vsel %vm502_vm4, %v496_v49, %v513_v56  ;;  %v1723_v3 = vsub.s32 32, %v1713_v58  ;;  %vm501_vm5 = vcmp.lt.s32.totalorder %v1697_v27, 2  ;;  %v504_v4 = vsel %vm500_vm3, %v484_v52, %v487_v51 }
  0xa2   : > { %v342_v5 = vshll.u32 %v1558_v33, %v1713_v58  ;;  %v506_v6 = vsel %vm502_vm4, %v490_v53, %v505_v59  ;;  %v511_v7 = vsel %vm501_vm5, %v508_v60, %v510_v61  ;;  %v515_v8 = vsel %vm501_vm5, %v512_v62, %v514_v63 }
  0xa3   : > { %v340_v10 = vshrl.u32 %v1558_v33, %v1723_v3  ;;  %v343_v11 = vshrl.u32 %v1560_v39, %v1723_v3  ;;  %v519_v13 = vand.u32 65535, %v515_v8  ;;  %v520_v15 = vshrl.u32 %v515_v8, 16 }
  0xa4   : > { %v541_v17 = vand.u32 65535, %v511_v7  ;;  %v542_v18 = vshrl.u32 %v511_v7, 16  ;;  %v339_v19 = vshll.u32 %v1557_v31, %v1713_v58  ;;  %vm348_vm6 = vcmp.lt.s32.totalorder %v1720_v1, 4 }
  0xa5   : > { %v344_v20 = vor.u32 %v343_v11, %v342_v5  ;;  %v522_v22 = vmul.u32 %v520_v15, %v1700_v29  ;;  %v1740_v24 = vsel %vm501_vm5, %v504_v4, %v506_v6  ;;  %v523_v25 = vmul.u32 %v519_v13, %v518_v16 }
  0xa6   : > { %v544_v26 = vmul.u32 %v542_v18, %v1700_v29  ;;  %v321_v28 = vor.u32 8388608, %v1718_v0  ;;  %v341_v32 = vor.u32 %v340_v10, %v339_v19  ;;  %v521_v33 = vmul.u32 %v519_v13, %v1700_v29 }
  0xa7   : > { %v524_v34 = vmul.u32 %v520_v15, %v518_v16  ;;  %v525_v35 = vshll.u32 %v522_v22, 16  ;;  %v358_v37 = vsel %vm348_vm6, %v344_v20, 1326507024  ;;  %v526_v38 = vshrl.u32 %v522_v22, 16 }
  0xa8   : > { %v543_v39 = vmul.u32 %v541_v17, %v1700_v29  ;;  %v545_v40 = vmul.u32 %v541_v17, %v518_v16  ;;  %v527_v27 = vshll.u32 %v523_v25, 16  ;;  %v547_v43 = vshll.u32 %v544_v26, 16 }
  0xa9   : > { %vm529_vm7 = vc.u32 %v521_v33, %v525_v35  ;;  %v531_v42 = vadd.s32 %v525_v35, %v521_v33  ;;  %v528_v44 = vshrl.u32 %v523_v25, 16  ;;  %v546_v47 = vmul.u32 %v542_v18, %v518_v16 }
  0xaa   : > { %v530_v46 = vsel %vm529_vm7, 1, %v1556_v2  ;;  %v549_v48 = vshll.u32 %v545_v40, 16  ;;  %vm551_vm9 = vc.u32 %v543_v39, %v547_v43  ;;  %v553_v50 = vadd.s32 %v547_v43, %v543_v39 }
  0xab   : > { %v532_v49 = vadd.s32 %v530_v46, %v524_v34  ;;  %vm533_vm8 = vc.u32 %v531_v42, %v527_v27  ;;  %v552_v52 = vsel %vm551_vm9, 1, %v1556_v2  ;;  %v330_v29 = vshll.u32 %v1559_v36, %v1713_v58 }
  0xac   : > { %v534_v51 = vsel %vm533_vm8, 1, %v1556_v2  ;;  %v331_v53 = vshrl.u32 %v1561_v41, %v1723_v3  ;;  %v548_v55 = vshrl.u32 %v544_v26, 16  ;;  %v554_v56 = vadd.s32 %v552_v52, %v546_v47 }
  0xad   : > { %v536_v54 = vadd.s32 %v534_v51, %v532_v49  ;;  %vm555_vm10 = vc.u32 %v553_v50, %v549_v48  ;;  %v333_v60 = vshll.u32 %v1561_v41, %v1713_v58  ;;  %v334_v61 = vshrl.u32 %v1562_v45, %v1723_v3 }
  0xae   : > { %v556_v57 = vsel %vm555_vm10, 1, %v1556_v2  ;;  %v1756_v59 = vor.u32 %v331_v53, %v330_v29  ;;  %v336_v0 = vshll.u32 %v1562_v45, %v1713_v58  ;;  %v337_v4 = vshrl.u32 %v1557_v31, %v1723_v3 }
  0xaf   : > { %v537_v62 = vadd.s32 %v536_v54, %v526_v38  ;;  %v558_v63 = vadd.s32 %v556_v57, %v554_v56  ;;  %v354_v5 = vsel %vm348_vm6, %v341_v32, 920167782  ;;  %v550_v6 = vshrl.u32 %v545_v40, 16 }
  0xb0   : > { %v1768_v7 = vor.u32 %v334_v61, %v333_v60  ;;  %vm345_vm11 = vcmp.lt.s32.totalorder %v1720_v1, 1  ;;  %v338_v10 = vor.u32 %v337_v4, %v336_v0  ;;  %vm347_vm12 = vcmp.lt.s32.totalorder %v1720_v1, 3 }
  0xb1   : > { %v1771_v41 = vadd.s32 %v537_v62, %v528_v44  ;;  %v559_v8 = vadd.s32 %v558_v63, %v548_v55  ;;  %v1774_v11 = vadd.s32 %v553_v50, %v549_v48  ;;  %v359_v45 = vsel %vm347_vm12, %v341_v32, %v358_v37 }
  0xb2   : > { %v353_v31 = vsel %vm345_vm11, %v1756_v59, %v1768_v7  ;;  %v1782_v58 = vshll.u32 %v321_v28, 8  ;;  %vm346_vm14 = vcmp.lt.s32.totalorder %v1720_v1, 2  ;;  %v355_v15 = vsel %vm347_vm12, %v338_v10, %v354_v5 }
  0xb3   : > { %v560_v13 = vadd.s32 %v559_v8, %v550_v6  ;;  %vm563_vm13 = vc.u32 %v1771_v41, %v1774_v11  ;;  %v357_v16 = vsel %vm345_vm11, %v1768_v7, %v338_v10  ;;  %v561_v17 = vmul.u32 %v1695_v23, %v1740_v24 }
  0xb4   : > { %v356_v19 = vsel %vm346_vm14, %v353_v31, %v355_v15  ;;  %v360_v20 = vsel %vm346_vm14, %v357_v16, %v359_v45  ;;  %v362_v22 = vand.u32 65535, %v1782_v58  ;;  %v363_v25 = vshrl.u32 %v1782_v58, 16 }
  0xb5   : > { %v564_v18 = vadd.s32 1, %v560_v13  ;;  %v364_v26 = vand.u32 65535, %v360_v20  ;;  %v365_v28 = vshrl.u32 %v360_v20, 16  ;;  %v386_v33 = vand.u32 65535, %v356_v19 }
  0xb6   : > { %v387_v34 = vshrl.u32 %v356_v19, 16  ;;  %v277_v0 = vmul.f32 %v1683_v9, %v1683_v9  ;;  %v350_v4 = vsel %vm348_vm6, %v338_v10, 2102212464  ;;  %vm278_vm4 = vcmask 1042432  }
  0xb7   : > { %v565_v32 = vsel %vm563_vm13, %v564_v18, %v560_v13  ;;  %v367_v37 = vmul.u32 %v365_v28, %v362_v22  ;;  %v368_v38 = vmul.u32 %v364_v26, %v363_v25  ;;  %v366_v39 = vmul.u32 %v364_v26, %v362_v22 }
  0xb8   : > { %v566_v35 = vadd.s32 %v565_v32, %v561_v17  ;;  %v389_v23 = vmul.u32 %v387_v34, %v362_v22  ;;  %v369_v27 = vmul.u32 %v365_v28, %v363_v25  ;;  %v388_v42 = vmul.u32 %v386_v33, %v362_v22 }
  0xb9   : > { %v370_v40 = vshll.u32 %v367_v37, 16  ;;  %v390_v43 = vmul.u32 %v386_v33, %v363_v25  ;;  %v372_v47 = vshll.u32 %v368_v38, 16  ;;  %v391_v52 = vmul.u32 %v387_v34, %v363_v25 }
  0xba   : > { %v567_v24 = vadd.s32 536870912, %v566_v35  ;;  %v392_v44 = vshll.u32 %v389_v23, 16  ;;  %v371_v57 = vshrl.u32 %v367_v37, 16  ;;  %v329_v8 = vshrl.u32 %v1559_v36, %v1723_v3 }
  0xbb   : > { %vm374_vm15 = vc.u32 %v366_v39, %v370_v40  ;;  %v376_v48 = vadd.s32 %v370_v40, %v366_v39  ;;  %v394_v53 = vshll.u32 %v390_v43, 16  ;;  %v373_v31 = vshrl.u32 %v368_v38, 16 }
  0xbc   : > { %v1800_v46 = vshrl.u32 %v567_v24, 30  ;;  %v375_v49 = vsel %vm374_vm15, 1, %v1556_v2  ;;  %vm396_vm0 = vc.u32 %v388_v42, %v392_v44  ;;  %v398_v55 = vadd.s32 %v392_v44, %v388_v42 }
  0xbd   : > { %v377_v51 = vadd.s32 %v375_v49, %v369_v27  ;;  %vm378_vm1 = vc.u32 %v376_v48, %v372_v47  ;;  %v397_v54 = vsel %vm396_vm0, 1, %v1556_v2  ;;  %v393_v13 = vshrl.u32 %v389_v23, 16 }
  0xbe   : > { %v569_v50 = vshll.u32 %v1800_v46, 30  ;;  %v379_v29 = vsel %vm378_vm1, 1, %v1556_v2  ;;  %v399_v61 = vadd.s32 %v397_v54, %v391_v52  ;;  %vm400_vm2 = vc.u32 %v398_v55, %v394_v53 }
  0xbf   : > { %v381_v60 = vadd.s32 %v379_v29, %v377_v51  ;;  %v401_v5 = vsel %vm400_vm2, 1, %v1556_v2  ;;  %v349_v16 = vsel %vm345_vm11, %v329_v8, %v1756_v59  ;;  %v351_v9 = vsel %vm347_vm12, %v1768_v7, %v350_v4 }
  0xc0   : > { %v570_v56 = vsub.s32 %v566_v35, %v569_v50  ;;  %v403_v15 = vadd.s32 %v401_v5, %v399_v61  ;;  %v279_v17 = vsel %vm278_vm4, %v277_v0, 0.0  ;;  %v395_v18 = vshrl.u32 %v390_v43, 16 }
  0xc1   : > { %v382_v63 = vadd.s32 %v381_v60, %v371_v57  ;;  %v402_v20 = vadd.s32 %v398_v55, %v394_v53  ;;  %v352_v36 = vsel %vm346_vm14, %v349_v16, %v351_v9  ;;  %v280_v22 = vrot.slane %v279_v17, 4 }
  0xc2   : > { %vm571_vm3 = vcmp.lt.s32.totalorder %v570_v56, 0  ;;  %v572_v62 = vsub.s32 0, %v570_v56  ;;  %v404_v19 = vadd.s32 %v403_v15, %v393_v13  ;;  %v562_v59 = vadd.s32 %v1774_v11, %v1771_v41 }
  0xc3   : > { %v383_v10 = vadd.s32 %v382_v63, %v373_v31  ;;  %v406_v32 = vmul.u32 %v1782_v58, %v352_v36  ;;  %v281_v23 = vadd.f32 %v280_v22, %v279_v17  ;;  %vm470_vm7 = vcmp.lt.s32.totalorder %v1686_v12, 0 }
  0xc4   : > { %v573_v6 = vsel %vm571_vm3, %v572_v62, %v570_v56  ;;  %v405_v3 = vadd.s32 %v404_v19, %v395_v18  ;;  %vm1830_vm9 = vcmp.le.f32.partialorder %v468_v14, 0.7853982  ;;  %v592_v61 = vsub.s32 4, %v1800_v46 }
  0xc5   : > { %v574_v45 = vclz %v573_v6  ;;  %vm408_vm6 = vc.u32 %v383_v10, %v402_v20  ;;  %v282_v42 = vrot.slane %v281_v23, 2  ;;  %v407_v6 = vadd.s32 %v402_v20, %v383_v10 }
  0xc6   : > { %v409_v7 = vadd.s32 1, %v405_v3  ;;  %v593_v31 = vsel %vm470_vm7, %v592_v61, %v1800_v46  ;;  %vm611_vm14 = vweird.f32 %v1686_v12  ;;  %vm315_vm15 = vcmp.lt.s32.totalorder %v1692_v21, 0 }
  0xc7   : > { %v1390_v2 = vadd.s32 4294967294, %v574_v45  ;;  %v283_v58 = vadd.f32 %v282_v42, %v281_v23  ;;  %vm314_vm0 = vcmp.le.f32.partialorder %v313_v30, 0.7853982 }
  0xc8   : > { %v410_v37 = vsel %vm408_vm6, %v409_v7, %v405_v3 }
  0xc9   : > { %vm1391_vm5 = vcmp.lt.s32.totalorder %v1390_v2, 0  ;;  %v411_v38 = vadd.s32 %v410_v37, %v406_v32  ;;  %v284_v53 = vrot.slane %v283_v58, 1 }
  0xca   : > { %v577_v25 = vsel %vm1391_vm5, 0, %v1390_v2  ;;  %v595_v2 = vsel %vm1830_vm9, 0, %v593_v31 }
  0xcb   : > { %v578_v26 = vsub.s32 32, %v577_v25  ;;  %v582_v28 = vsub.s32 4294967266, %v577_v25  ;;  %v579_v33 = vshll.u32 %v570_v56, %v577_v25  ;;  %v412_v39 = vadd.s32 536870912, %v411_v38 }
  0xcc   : > { %v1840_v14 = vadd.f32 %v284_v53, %v283_v58  ;;  %v921_v22 = vand.u32 3, %v595_v2 }
  0xcd   : > { %v580_v34 = vshrl.u32 %v562_v59, %v578_v26  ;;  %v583_v35 = vadd.s32 127, %v582_v28  ;;  %v1824_v27 = vshrl.u32 %v412_v39, 30 }
  0xce   : > { %1489 = vrsqrt.f32 %v1840_v14  ;;  %vm923_vm11 = vcmp.eq.s32.totalorder %v921_v22, 0  ;;  %vm926_vm12 = vcmp.eq.s32.totalorder %v921_v22, 2  ;;  %vm922_vm13 = vcmp.lt.s32.totalorder %v921_v22, 2  ;;  %v935_v22 = vld [vmem:[%s2073_s2] sm:$0xff] }
  0xcf   : > { %v581_v1 = vor.u32 %v580_v34, %v579_v33  ;;  %v584_v24 = vshll.u32 %v583_v35, 23  ;;  %v414_v11 = vshll.u32 %v1824_v27, 30  ;;  %vm293_vm5 = vcmp.eq.f32.partialorder %v1840_v14, inf }
  0xd1   : > { %v585_v40 = vor.u32 4788187, %v584_v24  ;;  %v588_v41 = vcvt.s32.f32 %v581_v1  ;;  %v415_v47 = vsub.s32 %v411_v38, %v414_v11 }
  0xd3   : > { %v586_v43 = vand.u32 2147483647, %v585_v40  ;;  %vm416_vm8 = vcmp.lt.s32.totalorder %v415_v47, 0  ;;  %v417_v49 = vsub.s32 0, %v415_v47  ;;  %v437_v40 = vsub.s32 4, %v1824_v27 }
  0xd4   : > { %v1490_v25 = vpop.eup %1489 }
  0xd5   : > { %v589_v44 = vmul.f32 %v588_v41, %v586_v43  ;;  %v418_v29 = vsel %vm416_vm8, %v417_v49, %v415_v47  ;;  %v287_v34 = vmul.f32 %v1490_v25, %v1840_v14  ;;  %v612_v49 = vadd.s32 3, %v595_v2 }
  0xd6   : > { %v419_v55 = vclz %v418_v29 }
  0xd7   : > { %v590_v48 = vxor.u32 2147483648, %v589_v44  ;;  %v288_v39 = vmul.f32 %v1490_v25, %v287_v34  ;;  %v950_v34 = vld [vmem:[%s2073_s2 + $0x78] sm:$0xff] }
  0xd8   : > { %v1387_v60 = vadd.s32 4294967294, %v419_v55 }
  0xd9   : > { %v591_v51 = vsel %vm470_vm7, %v590_v48, %v589_v44  ;;  %v289_v44 = vmul.f32 0.5, %v288_v39 }
  0xda   : > { %v594_v52 = vsel %vm1830_vm9, %v1686_v12, %v591_v51  ;;  %vm1388_vm10 = vcmp.lt.s32.totalorder %v1387_v60, 0  ;;  %vm295_vm9 = vcmp.eq.f32.partialorder %v1840_v14, 0.0  ;;  %v936_v12 = vld [vmem:[%s2073_s2 + $0x8] sm:$0xff] }
  0xdb   : > { %v596_v54 = vmul.f32 %v594_v52, %v594_v52  ;;  %v422_v0 = vsel %vm1388_vm10, 0, %v1387_v60  ;;  %v290_v29 = vsub.f32 1.5, %v289_v44  ;;  %vm456_vm10 = vweird.f32 %v1692_v21 }
  0xdc   : > { %v423_v8 = vsub.s32 32, %v422_v0  ;;  %v427_v45 = vsub.s32 4294967266, %v422_v0  ;;  %v424_v9 = vshll.u32 %v415_v47, %v422_v0  ;;  %v438_v47 = vsel %vm315_vm15, %v437_v40, %v1824_v27 }
  0xdd   : > { %v597_v56 = vmul.f32 -0.001358992, %v596_v54  ;;  %v604_v57 = vmul.f32 -0.00019511016, %v596_v54  ;;  %v440_v50 = vsel %vm314_vm0, 0, %v438_v47  ;;  %v291_v60 = vmul.f32 %v1490_v25, %v290_v29  ;;  %v937_v25 = vld [vmem:[%s2073_s2 + $0x10] sm:$0xff] }
  0xde   : > { %v425_v16 = vshrl.u32 %v407_v6, %v423_v8  ;;  %v428_v17 = vadd.s32 127, %v427_v45  ;;  %v767_v61 = vand.u32 3, %v440_v50  ;;  %v296_v45 = vand.u32 2147483648, %v1840_v14 }
  0xdf   : > { %v598_v62 = vadd.f32 0.041655596, %v597_v56  ;;  %v605_v63 = vadd.f32 0.008332121, %v604_v57  ;;  %v613_v57 = vand.u32 3, %v612_v49 }
  0xe0   : > { %v426_v36 = vor.u32 %v425_v16, %v424_v9  ;;  %v429_v10 = vshll.u32 %v428_v17, 23  ;;  %vm768_vm2 = vcmp.lt.s32.totalorder %v767_v61, 2  ;;  %vm769_vm6 = vcmp.eq.s32.totalorder %v767_v61, 0 }
  0xe1   : > { %v599_v4 = vmul.f32 %v598_v62, %v596_v54  ;;  %v606_v5 = vmul.f32 %v605_v63, %v596_v54  ;;  %vm614_vm1 = vcmp.lt.s32.totalorder %v613_v57, 2  ;;  %vm615_vm3 = vcmp.eq.s32.totalorder %v613_v57, 0 }
  0xe2   : > { %v430_v46 = vor.u32 4788187, %v429_v10  ;;  %v433_v7 = vcvt.s32.f32 %v426_v36  ;;  %vm618_vm4 = vcmp.eq.s32.totalorder %v613_v57, 2  ;;  %vm772_vm7 = vcmp.eq.s32.totalorder %v767_v61, 2 }
  0xe3   : > { %v600_v13 = vadd.f32 -0.4999988, %v599_v4  ;;  %v607_v15 = vadd.f32 -0.16666654, %v606_v5  ;;  %v292_v5 = vmul.f32 %v291_v60, %v1840_v14 }
  0xe4   : > { %v431_v28 = vand.u32 2147483647, %v430_v46  ;;  %v946_v46 = vld [vmem:[%s2073_s2 + $0x58] sm:$0xff] }
  0xe5   : > { %v601_v18 = vmul.f32 %v600_v13, %v596_v54  ;;  %v608_v19 = vmul.f32 %v607_v15, %v596_v54  ;;  %v457_v54 = vadd.s32 3, %v440_v50  ;;  %v294_v9 = vsel %vm293_vm5, %v1840_v14, %v292_v5  ;;  %v945_v14 = vld [vmem:[%s2073_s2 + $0x50] sm:$0xff] }
  0xe6   : > { %v434_v33 = vmul.f32 %v433_v7, %v431_v28  ;;  %v297_v10 = vsel %vm295_vm9, %v296_v45, %v294_v9  ;;  %v948_v28 = vld [vmem:[%s2073_s2 + $0x68] sm:$0xff]  ;;  %v939_v7 = vld [vmem:[%s2073_s2 + $0x20] sm:$0xff] }
  0xe7   : > { %v1848_v20 = vadd.f32 1.0, %v601_v18  ;;  %v609_v3 = vadd.f32 1.0, %v608_v19  ;;  %v458_v0 = vand.u32 3, %v457_v54  ;;  %v1109_v9 = vld [vmem:[%s2075_s4 + $0x60] sm:$0xff] }
  0xe8   : > { %v435_v23 = vxor.u32 2147483648, %v434_v33 }
  0xe9   : > { %v610_v59 = vmul.f32 %v609_v3, %v594_v52  ;;  %v619_v26 = vxor.u32 2147483648, %v1848_v20  ;;  %vm460_vm8 = vcmp.eq.s32.totalorder %v458_v0, 0 }
  0xea   : > { %v436_v24 = vsel %vm315_vm15, %v435_v23, %v434_v33  ;;  %vm933_vm15 = vcmask 1041408   ;;  %v940_v33 = vld [vmem:[%s2073_s2 + $0x28] sm:$0xff] }
  0xeb   : > { %v616_v32 = vxor.u32 2147483648, %v610_v59  ;;  %v928_v37 = vsel %vm926_vm12, %v619_v26, %v610_v59  ;;  %v439_v42 = vsel %vm314_vm0, %v1692_v21, %v436_v24  ;;  %v620_v31 = vsel %vm618_vm4, %v619_v26, %v610_v59  ;;  %v947_v59 = vld [vmem:[%s2073_s2 + $0x60] sm:$0xff]  ;;  %v938_v26 = vld [vmem:[%s2073_s2 + $0x18] sm:$0xff]  ;;  %v944_v23 = vld [vmem:[%s2073_s2 + $0x48] sm:$0xff] }
  0xec   : > { %v441_v43 = vmul.f32 %v439_v42, %v439_v42  ;;  %vm459_vm12 = vcmp.lt.s32.totalorder %v458_v0, 2  ;;  %vm951_vm0 = vcmask 326656  }
  0xed   : > { %v925_v35 = vsel %vm923_vm11, %v1848_v20, %v616_v32  ;;  %v617_v8 = vsel %vm615_vm3, %v1848_v20, %v616_v32  ;;  %vm463_vm11 = vcmp.eq.s32.totalorder %v458_v0, 2  ;;  %v949_v32 = vld [vmem:[%s2073_s2 + $0x70] sm:$0xff] }
  0xee   : > { %v929_v38 = vsel %vm922_vm13, %v925_v35, %v928_v37  ;;  %v442_v41 = vmul.f32 -0.001358992, %v441_v43  ;;  %v449_v11 = vmul.f32 -0.00019511016, %v441_v43  ;;  %v621_v2 = vsel %vm614_vm1, %v617_v8, %v620_v31  ;;  %v941_v35 = vld [vmem:[%s2073_s2 + $0x30] sm:$0xff]  ;;  %v942_v37 = vld [vmem:[%s2073_s2 + $0x38] sm:$0xff] }
  0xef   : > { %v930_v1 = vsel %vm611_vm14, nan, %v929_v38  ;;  %vm931_vm13 = vcmask 1040384   ;;  %v622_v20 = vsel %vm611_vm14, nan, %v621_v2  ;;  %v943_v38 = vld [vmem:[%s2073_s2 + $0x40] sm:$0xff]  ;;  %v1107_v8 = vld [vmem:[%s2075_s4 + $0x50] sm:$0xff]  ;;  %v1082_v2 = vld [vmem:[%s2074_s3 + $0x8] sm:$0xff] }
  0xf0   : > { %1011 = vmatpush.msra.mxu0 %v930_v1  ;;  %1419 = vmatpush.msra.mxu2 %v930_v1  ;;  %v443_v58 = vadd.f32 0.041655596, %v442_v41  ;;  %v450_v48 = vadd.f32 0.008332121, %v449_v11  ;;  %v932_v3 = vsel %vm931_vm13, 1.0, %v297_v10  ;;  %v1083_v10 = vld [vmem:[%s2074_s3 + $0x10] sm:$0xff] }
  0xf2   : > { %v444_v51 = vmul.f32 %v443_v58, %v441_v43  ;;  %v451_v52 = vmul.f32 %v450_v48, %v441_v43 }
  0xf4   : > { %v445_v30 = vadd.f32 -0.4999988, %v444_v51  ;;  %v452_v53 = vadd.f32 -0.16666654, %v451_v52 }
  0xf6   : > { %v446_v55 = vmul.f32 %v445_v30, %v441_v43  ;;  %v453_v56 = vmul.f32 %v452_v53, %v441_v43 }
  0xf8   : > { %v447_v62 = vadd.f32 1.0, %v446_v55  ;;  %v454_v63 = vadd.f32 1.0, %v453_v56  ;;  %v1112_v56 = vld [vmem:[%s2075_s4 + $0x78] sm:$0xff] }
  0xf9   : > { %1190 = vperm.xlu1 %1487, %v1112_v56  }
  0xfa   : > { %v455_v4 = vmul.f32 %v454_v63, %v439_v42  ;;  %v464_v27 = vxor.u32 2147483648, %v447_v62  ;;  %v1111_v63 = vld [vmem:[%s2075_s4 + $0x70] sm:$0xff] }
  0xfc   : > { %v461_v6 = vxor.u32 2147483648, %v455_v4  ;;  %v774_v15 = vsel %vm772_vm7, %v464_v27, %v455_v4  ;;  %v465_v19 = vsel %vm463_vm11, %v464_v27, %v455_v4 }
  0xfe   : > { %v771_v13 = vsel %vm769_vm6, %v447_v62, %v461_v6  ;;  %v462_v16 = vsel %vm460_vm8, %v447_v62, %v461_v6  ;;  %v1110_v6 = vld [vmem:[%s2075_s4 + $0x68] sm:$0xff] }
  0xff   : > { %v775_v17 = vsel %vm768_vm2, %v771_v13, %v774_v15  ;;  %v466_v36 = vsel %vm459_vm12, %v462_v16, %v465_v19  ;;  %1180 = vperm.xlu2 %1488, %v1110_v6   ;;  %v1081_v15 = vld [vmem:[%s2074_s3] sm:$0xff]  ;;  %v1106_v19 = vld [vmem:[%s2075_s4 + $0x48] sm:$0xff] }
 0x100   : > { %v776_v18 = vsel %vm456_vm10, nan, %v775_v17  ;;  %v467_v21 = vsel %vm456_vm10, nan, %v466_v36  ;;  %v1089_v16 = vld [vmem:[%s2074_s3 + $0x40] sm:$0xff]  ;;  %v1104_v17 = vld [vmem:[%s2075_s4 + $0x38] sm:$0xff] }
 0x101   : > { %1012 = vmatpush.msra.mxu0 %v776_v18  ;;  %1420 = vmatpush.msra.mxu2 %v776_v18  ;;  %v1090_v18 = vld [vmem:[%s2074_s3 + $0x48] sm:$0xff]  ;;  %v1101_v36 = vld [vmem:[%s2075_s4 + $0x20] sm:$0xff] }
 0x102   : > { %1185 = vperm.xlu1 %1487, %v1111_v63  }
 0x103   : > { %1013 = vmatpush.msra.mxu0 %v622_v20  ;;  %1421 = vmatpush.msra.mxu2 %v622_v20  ;;  %v1091_v20 = vld [vmem:[%s2074_s3 + $0x50] sm:$0xff] }
 0x105   : > { %1014 = vmatpush.msra.mxu0 %v467_v21  ;;  %1422 = vmatpush.msra.mxu2 %v467_v21  ;;  %v1103_v21 = vld [vmem:[%s2075_s4 + $0x30] sm:$0xff] }
 0x107   : > { %1398 = vmatpush.msk.msra.mxu0 %vm933_vm15, %v932_v3  ;;  %1423 = vmatpush.msk.msra.mxu2 %vm933_vm15, %v932_v3  ;;  %v1098_v3 = vld [vmem:[%s2075_s4 + $0x8] sm:$0xff] }
 0x108   : > { %1399 = vmatmul.msk.f32.vlgmr.msra.gmra.mxu0 %vm951_vm0, %v935_v22  ;;  %1409 = vmatmul.msk.f32.vlgmr.msra.gmra.mxu2 %vm951_vm0, %v945_v14  ;;  %v1084_v22 = vld [vmem:[%s2074_s3 + $0x18] sm:$0xff] }
 0x109   : > { %1175 = vperm.xlu2 %1488, %v1109_v9   ;;  %v1092_v14 = vld [vmem:[%s2074_s3 + $0x58] sm:$0xff] }
 0x10a   : > { %1165 = vperm.xlu1 %1487, %v1107_v8  }
 0x110   : > { %1400 = vmatmul.msk.f32.gmra.mxu0 %vm951_vm0, %v936_v12  ;;  %1410 = vmatmul.msk.f32.gmra.mxu2 %vm951_vm0, %v946_v46  ;;  %v1100_v12 = vld [vmem:[%s2075_s4 + $0x18] sm:$0xff]  ;;  %v1085_v46 = vld [vmem:[%s2074_s3 + $0x20] sm:$0xff] }
 0x111   : > { %1160 = vperm.xlu2 %1488, %v1106_v19  }
 0x112   : > { %1150 = vperm.xlu1 %1487, %v1104_v17  }
 0x118   : > { %1401 = vmatmul.msk.f32.gmra.mxu0 %vm951_vm0, %v937_v25  ;;  %1411 = vmatmul.msk.f32.gmra.mxu2 %vm951_vm0, %v947_v59  ;;  %v1093_v25 = vld [vmem:[%s2074_s3 + $0x60] sm:$0xff] }
 0x119   : > { %1145 = vperm.xlu2 %1488, %v1103_v21   ;;  %v1097_v59 = vld [vmem:[%s2075_s4] sm:$0xff] }
 0x11a   : > { %1135 = vperm.xlu1 %1487, %v1101_v36  }
 0x120   : > { %1402 = vmatmul.msk.f32.gmra.mxu0 %vm951_vm0, %v938_v26  ;;  %1412 = vmatmul.msk.f32.gmra.mxu2 %vm951_vm0, %v948_v28  ;;  %v1086_v26 = vld [vmem:[%s2074_s3 + $0x28] sm:$0xff] }
 0x121   : > { %1130 = vperm.xlu2 %1488, %v1100_v12   ;;  %v1094_v28 = vld [vmem:[%s2074_s3 + $0x68] sm:$0xff] }
 0x122   : > { %1120 = vperm.xlu1 %1487, %v1098_v3  }
 0x128   : > { %1403 = vmatmul.msk.f32.gmra.mxu0 %vm951_vm0, %v939_v7  ;;  %1413 = vmatmul.msk.f32.gmra.mxu2 %vm951_vm0, %v949_v32  ;;  %v1095_v7 = vld [vmem:[%s2074_s3 + $0x70] sm:$0xff] }
 0x129   : > { %1115 = vperm.xlu2 %1488, %v1097_v59   ;;  %v1087_v32 = vld [vmem:[%s2074_s3 + $0x30] sm:$0xff] }
 0x130   : > { %1404 = vmatmul.msk.f32.gmra.mxu0 %vm951_vm0, %v940_v33  ;;  %1414 = vmatmul.msk.f32.gmra.mxu2 %vm951_vm0, %v950_v34  ;;  %v1096_v33 = vld [vmem:[%s2074_s3 + $0x78] sm:$0xff] }
 0x131   : > { %v1088_v34 = vld [vmem:[%s2074_s3 + $0x38] sm:$0xff] }
 0x138   : > { %1405 = vmatmul.msk.f32.gmra.mxu0 %vm951_vm0, %v941_v35 }
 0x140   : > { %1406 = vmatmul.msk.f32.gmra.mxu0 %vm951_vm0, %v942_v37 }
 0x148   : > { %1407 = vmatmul.msk.f32.gmra.mxu0 %vm951_vm0, %v943_v38 }
 0x150   : > { %1408 = vmatmul.msk.f32.gmra.mxu0 %vm951_vm0, %v944_v23 }
 0x185   : > { %v1939_v1 = vpop.f32.mrf.mxu0 }
 0x186   : > { %v1065_v13 = vmax.f32 %v1939_v1, 0.0 }
 0x18b   : > { %v1047_v24 = vpop.f32.mrf.mxu2 }
 0x18c   : > { %v1075_v54 = vmax.f32 %v1047_v24, 0.0 }
 0x18d   : > { %v1941_v39 = vpop.f32.mrf.mxu0 }
 0x18e   : > { %v1066_v45 = vmax.f32 %v1941_v39, 0.0 }
 0x193   : > { %v1050_v40 = vpop.f32.mrf.mxu2 }
 0x194   : > { %v1076_v30 = vmax.f32 %v1050_v40, 0.0 }
 0x195   : > { %v1023_v42 = vpop.f32.mrf.mxu0 }
 0x196   : > { %v1067_v31 = vmax.f32 %v1023_v42, 0.0  ;;  %v1191_v42 = vpop.permute.xlu1 %1190 }
 0x19b   : > { %v1053_v43 = vpop.f32.mrf.mxu2 }
 0x19c   : > { %v1077_v29 = vmax.f32 %v1053_v43, 0.0  ;;  %v1181_v43 = vpop.permute.xlu2 %1180 }
 0x19d   : > { %v1026_v41 = vpop.f32.mrf.mxu0 }
 0x19e   : > { %v1068_v5 = vmax.f32 %v1026_v41, 0.0 }
 0x1a3   : > { %v1056_v11 = vpop.f32.mrf.mxu2 }
 0x1a4   : > { %v1078_v52 = vmax.f32 %v1056_v11, 0.0 }
 0x1a5   : > { %v1029_v44 = vpop.f32.mrf.mxu0 }
 0x1a6   : > { %v1069_v27 = vmax.f32 %v1029_v44, 0.0  ;;  %v1186_v44 = vpop.permute.xlu1 %1185 }
 0x1ab   : > { %v1059_v47 = vpop.f32.mrf.mxu2 }
 0x1ac   : > { %v1079_v49 = vmax.f32 %v1059_v47, 0.0 }
 0x1ad   : > { %v1032_v58 = vpop.f32.mrf.mxu0 }
 0x1ae   : > { %v1070_v4 = vmax.f32 %v1032_v58, 0.0  ;;  %v1176_v58 = vpop.permute.xlu2 %1175 }
 0x1b3   : > { %v1062_v48 = vpop.f32.mrf.mxu2 }
 0x1b4   : > { %v1080_v50 = vmax.f32 %v1062_v48, 0.0 }
 0x1b5   : > { %v1035_v51 = vpop.f32.mrf.mxu0 }
 0x1b6   : > { %1193 = vmatpush.msra.mxu1 %v1080_v50  ;;  %1424 = vmatpush.msra.mxu3 %v1080_v50  ;;  %v1071_v0 = vmax.f32 %v1035_v51, 0.0  ;;  %v1171_v50 = vpop.permute.xlu0 %1170  ;;  %v1166_v51 = vpop.permute.xlu1 %1165 }
 0x1b8   : > { %1194 = vmatpush.msra.mxu1 %v1079_v49  ;;  %1425 = vmatpush.msra.mxu3 %v1079_v49 }
 0x1ba   : > { %1195 = vmatpush.msra.mxu1 %v1078_v52  ;;  %1426 = vmatpush.msra.mxu3 %v1078_v52  ;;  %v1161_v52 = vpop.permute.xlu2 %1160 }
 0x1bc   : > { %1196 = vmatpush.msra.mxu1 %v1077_v29  ;;  %1427 = vmatpush.msra.mxu3 %v1077_v29 }
 0x1bd   : > { %v1038_v53 = vpop.f32.mrf.mxu0 }
 0x1be   : > { %1197 = vmatpush.msra.mxu1 %v1076_v30  ;;  %1428 = vmatpush.msra.mxu3 %v1076_v30  ;;  %v1072_v62 = vmax.f32 %v1038_v53, 0.0 }
 0x1c0   : > { %1198 = vmatpush.msra.mxu1 %v1075_v54  ;;  %1429 = vmatpush.msra.mxu3 %v1075_v54 }
 0x1c2   : > { %v1146_v63 = vpop.permute.xlu2 %1145 }
 0x1c5   : > { %v1041_v55 = vpop.f32.mrf.mxu0 }
 0x1c6   : > { %v1073_v61 = vmax.f32 %v1041_v55, 0.0 }
 0x1cd   : > { %v1044_v57 = vpop.f32.mrf.mxu0 }
 0x1ce   : > { %v1074_v60 = vmax.f32 %v1044_v57, 0.0  ;;  %v1156_v57 = vpop.permute.xlu0 %1155 }
 0x1d0   : > { %1199 = vmatpush.msra.mxu1 %v1074_v60  ;;  %1430 = vmatpush.msra.mxu3 %v1074_v60  ;;  %v1151_v60 = vpop.permute.xlu1 %1150 }
 0x1d2   : > { %1200 = vmatpush.msra.mxu1 %v1073_v61  ;;  %1431 = vmatpush.msra.mxu3 %v1073_v61 }
 0x1d4   : > { %1201 = vmatpush.msra.mxu1 %v1072_v62  ;;  %1432 = vmatpush.msra.mxu3 %v1072_v62 }
 0x1d6   : > { %1202 = vmatpush.msra.mxu1 %v1071_v0  ;;  %1433 = vmatpush.msra.mxu3 %v1071_v0 }
 0x1d8   : > { %1203 = vmatpush.msra.mxu1 %v1070_v4  ;;  %1434 = vmatpush.msra.mxu3 %v1070_v4 }
 0x1da   : > { %1204 = vmatpush.msra.mxu1 %v1069_v27  ;;  %1435 = vmatpush.msra.mxu3 %v1069_v27 }
 0x1dc   : > { %1205 = vmatpush.msra.mxu1 %v1068_v5  ;;  %1436 = vmatpush.msra.mxu3 %v1068_v5 }
 0x1de   : > { %1206 = vmatpush.msra.mxu1 %v1067_v31  ;;  %1437 = vmatpush.msra.mxu3 %v1067_v31 }
 0x1e0   : > { %1207 = vmatpush.msra.mxu1 %v1066_v45  ;;  %1438 = vmatpush.msra.mxu3 %v1066_v45 }
 0x1e2   : > { %1208 = vmatpush.msra.mxu1 %v1065_v13  ;;  %1439 = vmatpush.msra.mxu3 %v1065_v13 }
 0x1e3   : > { %1209 = vmatmul.f32.vlgmr.msra.gmra.mxu1 %v1081_v15  ;;  %1233 = vmatmul.f32.vlgmr.msra.gmra.mxu3 %v1089_v16  ;;  %v1141_v15 = vpop.permute.xlu0 %1140  ;;  %v1136_v16 = vpop.permute.xlu1 %1135 }
 0x1eb   : > { %1212 = vmatmul.f32.gmra.mxu1 %v1082_v2  ;;  %1236 = vmatmul.f32.gmra.mxu3 %v1090_v18  ;;  %v1131_v2 = vpop.permute.xlu2 %1130  ;;  %v1121_v12 = vpop.permute.xlu1 %1120 }
 0x1f3   : > { %1215 = vmatmul.f32.gmra.mxu1 %v1083_v10  ;;  %1239 = vmatmul.f32.gmra.mxu3 %v1091_v20  ;;  %v1116_v59 = vpop.permute.xlu2 %1115 }
 0x1fb   : > { %1218 = vmatmul.f32.gmra.mxu1 %v1084_v22  ;;  %1242 = vmatmul.f32.gmra.mxu3 %v1092_v14  ;;  %v1126_v14 = vpop.permute.xlu0 %1125 }
 0x203   : > { %1221 = vmatmul.f32.gmra.mxu1 %v1085_v46  ;;  %1245 = vmatmul.f32.gmra.mxu3 %v1093_v25 }
 0x20b   : > { %1224 = vmatmul.f32.gmra.mxu1 %v1086_v26  ;;  %1248 = vmatmul.f32.gmra.mxu3 %v1094_v28 }
 0x213   : > { %1251 = vmatmul.f32.gmra.mxu3 %v1095_v7  ;;  %1227 = vmatmul.f32.gmra.mxu1 %v1087_v32 }
 0x21b   : > { %1254 = vmatmul.f32.gmra.mxu3 %v1096_v33  ;;  %1230 = vmatmul.f32.gmra.mxu1 %v1088_v34 }
 0x260   : > { %v2029_v35 = vpop.f32.mrf.mxu1 }
 0x261   : > { %v1211_v32 = vadd.f32 %v2029_v35, %v1116_v59 }
 0x263   : > { %v1258_v34 = vmax.f32 %v1211_v32, 0.0 }
 0x266   : > { %v1234_v37 = vpop.f32.mrf.mxu3 }
 0x267   : > { %v1235_v45 = vadd.f32 %v1234_v37, %v1156_v57  ;;  %v1274_v37 = vld [vmem:[%s2076_s5] sm:$0x1] }
 0x268   : > { %v2031_v38 = vpop.f32.mrf.mxu1 }
 0x269   : > { %v1266_v18 = vmax.f32 %v1235_v45, 0.0  ;;  %v1214_v28 = vadd.f32 %v2031_v38, %v1121_v12 }
 0x26b   : > { %v1259_v33 = vmax.f32 %v1214_v28, 0.0 }
 0x26e   : > { %v1237_v23 = vpop.f32.mrf.mxu3 }
 0x26f   : > { %v1238_v6 = vadd.f32 %v1237_v23, %v1161_v52  ;;  %v1279_v23 = vpop.permute.xlu0 %1278 }
 0x270   : > { %v1216_v24 = vpop.f32.mrf.mxu1  ;;  %v1281_v38 = vperm.slane %v1279_v23, 0 }
 0x271   : > { %v1267_v9 = vmax.f32 %v1238_v6, 0.0  ;;  %v1217_v46 = vadd.f32 %v1216_v24, %v1126_v14 }
 0x273   : > { %v1260_v7 = vmax.f32 %v1217_v46, 0.0 }
 0x276   : > { %v1240_v1 = vpop.f32.mrf.mxu3 }
 0x277   : > { %v1241_v27 = vadd.f32 %v1240_v1, %v1166_v51 }
 0x278   : > { %v1219_v40 = vpop.f32.mrf.mxu1 }
 0x279   : > { %v1268_v13 = vmax.f32 %v1241_v27, 0.0  ;;  %v1220_v3 = vadd.f32 %v1219_v40, %v1131_v2 }
 0x27b   : > { %v1261_v26 = vmax.f32 %v1220_v3, 0.0 }
 0x27e   : > { %v1243_v39 = vpop.f32.mrf.mxu3 }
 0x27f   : > { %v1244_v0 = vadd.f32 %v1243_v39, %v1171_v50  ;;  %v1491_v39 = vld [vmem:[%s1680_s15] sm:$0xf] }
 0x280   : > { %v1222_v11 = vpop.f32.mrf.mxu1 }
 0x281   : > { %v1269_v8 = vmax.f32 %v1244_v0, 0.0  ;;  %v1223_v20 = vadd.f32 %v1222_v11, %v1136_v16 }
 0x283   : > { %v1262_v25 = vmax.f32 %v1223_v20, 0.0 }
 0x286   : > { %v1246_v41 = vpop.f32.mrf.mxu3 }
 0x287   : > { %v1247_v61 = vadd.f32 %v1246_v41, %v1176_v58 }
 0x288   : > { %v1225_v48 = vpop.f32.mrf.mxu1 }
 0x289   : > { %v1270_v5 = vmax.f32 %v1247_v61, 0.0  ;;  %v1226_v36 = vadd.f32 %v1225_v48, %v1141_v15 }
 0x28b   : > { %v1263_v22 = vmax.f32 %v1226_v36, 0.0 }
 0x28e   : > { %v1249_v47 = vpop.f32.mrf.mxu3 }
 0x28f   : > { %v1250_v55 = vadd.f32 %v1249_v47, %v1181_v43 }
 0x290   : > { %v1228_v54 = vpop.f32.mrf.mxu1 }
 0x291   : > { %v1271_v4 = vmax.f32 %v1250_v55, 0.0  ;;  %v1229_v19 = vadd.f32 %v1228_v54, %v1146_v63 }
 0x293   : > { %v1264_v21 = vmax.f32 %v1229_v19, 0.0 }
 0x296   : > { %v1252_v49 = vpop.f32.mrf.mxu3 }
 0x297   : > { %v1253_v30 = vadd.f32 %v1252_v49, %v1186_v44 }
 0x298   : > { %v1231_v31 = vpop.f32.mrf.mxu1 }
 0x299   : > { %v1272_v62 = vmax.f32 %v1253_v30, 0.0  ;;  %v1232_v17 = vadd.f32 %v1231_v31, %v1151_v60 }
 0x29b   : > { %v1265_v10 = vmax.f32 %v1232_v17, 0.0 }
 0x29e   : > { %v1255_v29 = vpop.f32.mrf.mxu3 }
 0x29f   : > { %v1256_v53 = vadd.f32 %v1255_v29, %v1191_v42 }
 0x2a1   : > { %v1273_v56 = vmax.f32 %v1256_v53, 0.0 }
 0x2a3   : > { %1282 = vmatpush.msrb.mxu2 %v1273_v56 }
 0x2a5   : > { %1283 = vmatpush.msrb.mxu2 %v1272_v62 }
 0x2a7   : > { %1284 = vmatpush.msrb.mxu2 %v1271_v4 }
 0x2a9   : > { %1285 = vmatpush.msrb.mxu2 %v1270_v5 }
 0x2ab   : > { %1286 = vmatpush.msrb.mxu2 %v1269_v8 }
 0x2ad   : > { %1287 = vmatpush.msrb.mxu2 %v1268_v13 }
 0x2af   : > { %1288 = vmatpush.msrb.mxu2 %v1267_v9 }
 0x2b1   : > { %1289 = vmatpush.msrb.mxu2 %v1266_v18 }
 0x2b3   : > { %1290 = vmatpush.msrb.mxu2 %v1265_v10 }
 0x2b5   : > { %1291 = vmatpush.msrb.mxu2 %v1264_v21 }
 0x2b7   : > { %1292 = vmatpush.msrb.mxu2 %v1263_v22 }
 0x2b9   : > { %1293 = vmatpush.msrb.mxu2 %v1262_v25 }
 0x2bb   : > { %1294 = vmatpush.msrb.mxu2 %v1261_v26 }
 0x2bd   : > { %1295 = vmatpush.msrb.mxu2 %v1260_v7 }
 0x2bf   : > { %1296 = vmatpush.msrb.mxu2 %v1259_v33 }
 0x2c1   : > { %1297 = vmatpush.msrb.mxu2 %v1258_v34 }
 0x2c2   : > { %1298 = vmatmul.f32.vlgmr.msrb.gmra.mxu2 %v1274_v37 }
 0x345   : > { %v1299_v35 = vpop.f32.mrf.mxu2 }
 0x346   : > { %v1300_v1 = vadd.f32 %v1299_v35, %v1281_v38 }
 0x348   : > { %v1302_v24 = vperm.slane %v1300_v1, 0 }
 0x34a   : > { %v1303_v40 = vmul.f32 %v1491_v39, %v1302_v24 }
 0x34c   : > { %1304 = vst [vmem:[%s271_s10] sm:$0x7] %v1303_v40 }
 0x34d   : > { %1519 = shalt.err (!%p1516_p3)
}
 0x34e   : > { %1440 = dma.vmem_to_hbm [thread:$0]  (%p1644_p5), %s1319_s14, 64, %s1321_s16, %s1306_s17  }
 0x34f PF: > { %p1446_p4 = scmp.ge.s32.totalorder %s1554_s29, 2  ;;  %s1332_s15 = sand.u32 1, %s1542_s26  }
 0x350   : > { %s1333_s22 = scalar_lea.sflag [#allocation4], %s1332_s15 }
 0x351   : > { %p1443_p7 = pnand %p1446_p4, %p1648_p6 }
 0x353   : > { %p1444_p8 = pneg %p1443_p7 }
 0x355   : > { %1537 = dma.done.wait (%p1444_p8), %s1333_s22, 64  }
 0x356   : > { %1539 = vsyncadd (%p1444_p8), %s1333_s22, 4294967232  ;;  %p19_p9 = scmp.ge.s32.totalorder %s1631_s8, 4   ;;  %s2083_s26 = smov %s1546_s27 }
 0x357   : > { %s2084_s27 = smov %s1550_s28  ;;  %s2085_s28 = smov %s1642_s11 }
 0x358   : > { %s2086_s29 = smov %s1631_s8  ;;  %21 = sbr.rel (!%p19_p9) target bundleno = 6 (0x6), region = 83 }
 0x35d   :  { %1339 = vsyncpa [#allocation4], 1 }
 0x35e   :  { %1341 = vsyncpa [#allocation4 + $0x1], 1 }

</bundles_post_ra>
